<compile_context>
chip_gen: v7x
topology: tpu7x:2x2x1
jax: 0.10.0
libtpu: 0.0.40
codegen_flags: <defaults>
</compile_context>

<pallas_src>
import functools

import jax
import jax.numpy as jnp
from jax.experimental import pallas as pl
from jax.experimental.pallas import tpu as pltpu


def _round_up(x, m):
    return ((x + m - 1) // m) * m


def _mlp_kernel(x_ref, w1_ref, b1_ref, w2_ref, b2_ref, w3_ref, b3_ref, o_ref):
    x = x_ref[...]                           # (tm_p, Kin) f32, packed rows
    w1 = w1_ref[...]                         # (Kin, C)   f32, block-diagonal

    # fc1 + relu on the VPU: Kin broadcast FMAs (Kin = 2*pack <= 8); an MXU
    # pass at this K would be ~97% padding.  Unrolled at trace time.
    h = b1_ref[...] + x[:, 0:1] * w1[0:1, :]
    for c in range(1, x.shape[1]):
        h = h + x[:, c:c + 1] * w1[c:c + 1, :]
    h = jnp.maximum(h, 0.0)                  # (tm_p, C) f32

    # fc2 + relu, fc3: full-f32 MXU matmuls with f32 accumulation.
    h = jnp.dot(h, w2_ref[...], preferred_element_type=jnp.float32)
    h = jnp.maximum(h + b2_ref[...], 0.0)
    h = jnp.dot(h, w3_ref[...], preferred_element_type=jnp.float32) + b3_ref[...]

    o_ref[...] = h.astype(o_ref.dtype)


@functools.partial(jax.jit, static_argnames=("block_m", "out_dtype"))
def control_point_encoder(x, params, block_m=4096, out_dtype=jnp.float32):
    """x: (B, N, 2) float32.  params: dict of w1,b1,w2,b2,w3,b3 with weights
    stored as (in_features, out_features).  Returns (B, N, H) in out_dtype.

    out_dtype defaults to float32 to match the PyTorch module; pass
    jnp.bfloat16 to halve writeback bytes if downstream accepts it."""
    w1, b1 = params["w1"], params["b1"]
    w2, b2 = params["w2"], params["b2"]
    w3, b3 = params["w3"], params["b3"]
    H = w1.shape[1]

    B, N, two = x.shape
    assert two == 2
    M = B * N

    # Lane packing: P logical rows share one 128-lane output row.
    # Falls back to P=1 (possibly masked stores) when H does not divide 128.
    P = 128 // H if (H <= 128 and 128 % H == 0) else 1
    cw = P * H          # packed feature width (128 when packing applies)
    kin = 2 * P         # packed input width

    # ---- pack the input: pure row-major reshape (free) ----------------------
    x2d = x.reshape(M, 2)
    m_ceil = _round_up(M, P)
    if m_ceil != M:                          # <= P-1 zero rows
        x2d = jnp.pad(x2d, ((0, m_ceil - M), (0, 0)))
    mp = m_ceil // P
    xp = x2d.reshape(mp, kin)

    # ---- packed-row tile selection ------------------------------------------
    if mp <= 8:
        tm_p = mp                            # single block == full (tiny) extent
        steps = 1
    else:
        tm_cap = max(8, _round_up(block_m // P, 8))
        n_steps = pl.cdiv(mp, tm_cap)
        if n_steps == 1 and mp >= 16:
            n_steps = 2                      # give each v7x TensorCore a step
        elif n_steps > 1 and n_steps % 2:
            n_steps += 1                     # even step count across the 2 TCs
        tm_p = max(8, _round_up(pl.cdiv(mp, n_steps), 8))
        steps = pl.cdiv(mp, tm_p)            # ragged last block handled by Pallas
    grid = (steps,)

    # ---- block-diagonal weights so the whole MLP runs on packed rows --------
    eye = jnp.eye(P, dtype=w1.dtype)
    w1p = jnp.kron(eye, w1)                  # (2P, C)
    w2p = jnp.kron(eye, w2)                  # (C, C)
    w3p = jnp.kron(eye, w3)                  # (C, C)
    b1p = jnp.tile(b1, (1, P))               # (1, C)
    b2p = jnp.tile(b2, (1, P))
    b3p = jnp.tile(b3, (1, P))

    # ---- VMEM budget: double-buffered tiles + weights + f32 intermediates ---
    out_itemsize = jnp.dtype(out_dtype).itemsize
    in_tile = tm_p * kin * 4
    out_tile = tm_p * cw * out_itemsize
    interm = 4 * tm_p * cw * 4
    weight_bytes = (kin * cw + 2 * cw * cw + 3 * cw) * 4
    vmem_limit = int(min(max(2 * (in_tile + out_tile) + interm + weight_bytes
                             + (4 << 20), 16 << 20), 48 << 20))

    cost = pl.CostEstimate(
        flops=mp * (2 * kin * cw + 4 * cw * cw),
        transcendentals=0,
        bytes_accessed=mp * kin * 4 + mp * cw * out_itemsize + weight_bytes,
    )

    out = pl.pallas_call(
        _mlp_kernel,
        out_shape=jax.ShapeDtypeStruct((mp, cw), out_dtype),
        grid_spec=pltpu.PrefetchScalarGridSpec(
            num_scalar_prefetch=0,
            grid=grid,
            in_specs=[
                pl.BlockSpec((tm_p, kin), lambda i: (i, 0)),   # packed x rows
                pl.BlockSpec((kin, cw), lambda i: (0, 0)),     # w1 block-diag
                pl.BlockSpec((1, cw), lambda i: (0, 0)),       # b1 tiled
                pl.BlockSpec((cw, cw), lambda i: (0, 0)),      # w2 block-diag
                pl.BlockSpec((1, cw), lambda i: (0, 0)),       # b2 tiled
                pl.BlockSpec((cw, cw), lambda i: (0, 0)),      # w3 block-diag
                pl.BlockSpec((1, cw), lambda i: (0, 0)),       # b3 tiled
            ],
            out_specs=pl.BlockSpec((tm_p, cw), lambda i: (i, 0)),
        ),
        compiler_params=pltpu.CompilerParams(
            dimension_semantics=("parallel",),
            vmem_limit_bytes=vmem_limit,
        ),
        cost_estimate=cost,
    )(xp, w1p, b1p, w2p, b2p, w3p, b3p)

    # Unpack: pure reshape in the common case; slice only when M % P != 0.
    if m_ceil == M:
        return out.reshape(B, N, H)
    return out.reshape(m_ceil, H)[:M].reshape(B, N, H)


def init_params(key, hidden_dim=64):
    """nn.Linear-style init U(-1/sqrt(fan_in), 1/sqrt(fan_in)).
    Weights stored transposed vs. PyTorch: (in_features, out_features)."""
    def linear_init(k, fan_in, fan_out):
        kw, kb = jax.random.split(k)
        bound = 1.0 / jnp.sqrt(fan_in)
        w = jax.random.uniform(kw, (fan_in, fan_out), jnp.float32, -bound, bound)
        b = jax.random.uniform(kb, (1, fan_out), jnp.float32, -bound, bound)
        return w, b

    k1, k2, k3 = jax.random.split(key, 3)
    w1, b1 = linear_init(k1, 2, hidden_dim)
    w2, b2 = linear_init(k2, hidden_dim, hidden_dim)
    w3, b3 = linear_init(k3, hidden_dim, hidden_dim)
    return {"w1": w1, "b1": b1, "w2": w2, "b2": b2, "w3": w3, "b3": b3}


def _reference(x, p):
    h = jnp.maximum(x @ p["w1"] + p["b1"][0], 0.0)
    h = jnp.maximum(h @ p["w2"] + p["b2"][0], 0.0)
    return h @ p["w3"] + p["b3"][0]


if __name__ == "__main__":
    hidden_dim = 32                      # P = 4 logical rows per 128-lane row
    B, N = 2, 16                         # 2 batches of 16 control points (x, y)

    key = jax.random.PRNGKey(0)
    kx, kp = jax.random.split(key)
    x = jax.random.normal(kx, (B, N, 2), jnp.float32)
    params = init_params(kp, hidden_dim=hidden_dim)

    out = control_point_encoder(x, params)
    out = jax.block_until_ready(out)

    ref = _reference(x, params)
    assert out.shape == (B, N, hidden_dim)
    # f32 matmuls throughout -> tight tolerance (previous bf16 version needed 2e-2).
    assert jnp.allclose(out, ref, atol=1e-3, rtol=1e-3), float(
        jnp.max(jnp.abs(out - ref)))

    print("KERNEL_OK")
</pallas_src>

<mosaic_0001>
module attributes {stable_mosaic.version = 11 : i64} {
  func.func @_mlp_kernel(%arg0: i32, %arg1: memref<8x8xf32, #tpu.memory_space<vmem>>, %arg2: memref<8x128xf32, #tpu.memory_space<vmem>>, %arg3: memref<1x128xf32, #tpu.memory_space<vmem>>, %arg4: memref<128x128xf32, #tpu.memory_space<vmem>>, %arg5: memref<1x128xf32, #tpu.memory_space<vmem>>, %arg6: memref<128x128xf32, #tpu.memory_space<vmem>>, %arg7: memref<1x128xf32, #tpu.memory_space<vmem>>, %arg8: memref<8x128xf32, #tpu.memory_space<vmem>>) attributes {dimension_semantics = [#tpu.dimension_semantics<parallel>], iteration_bounds = array<i64: 1>, scalar_prefetch = 0 : i64, scratch_operands = 0 : i64, tpu.core_type = #tpu.core_type<tc>, window_params = [{transform_indices = @transform_0, window_bounds = array<i64: 8, 8>}, {pipeline_mode = #tpu.pipeline_mode<synchronous>, transform_indices = @transform_1, window_bounds = array<i64: 8, 128>}, {pipeline_mode = #tpu.pipeline_mode<synchronous>, transform_indices = @transform_2, window_bounds = array<i64: 1, 128>}, {pipeline_mode = #tpu.pipeline_mode<synchronous>, transform_indices = @transform_3, window_bounds = array<i64: 128, 128>}, {pipeline_mode = #tpu.pipeline_mode<synchronous>, transform_indices = @transform_4, window_bounds = array<i64: 1, 128>}, {pipeline_mode = #tpu.pipeline_mode<synchronous>, transform_indices = @transform_5, window_bounds = array<i64: 128, 128>}, {pipeline_mode = #tpu.pipeline_mode<synchronous>, transform_indices = @transform_6, window_bounds = array<i64: 1, 128>}, {transform_indices = @transform_7, window_bounds = array<i64: 8, 128>}]} {
    %c0 = arith.constant 0 : index
    %c0_0 = arith.constant 0 : index
    %0 = vector.load %arg1[%c0, %c0_0] : memref<8x8xf32, #tpu.memory_space<vmem>>, vector<8x8xf32>
    %c0_1 = arith.constant 0 : index
    %c0_2 = arith.constant 0 : index
    %1 = vector.load %arg2[%c0_1, %c0_2] : memref<8x128xf32, #tpu.memory_space<vmem>>, vector<8x128xf32>
    %c0_3 = arith.constant 0 : index
    %c0_4 = arith.constant 0 : index
    %2 = vector.load %arg3[%c0_3, %c0_4] : memref<1x128xf32, #tpu.memory_space<vmem>>, vector<1x128xf32>
    %3 = vector.extract_strided_slice %0 {offsets = [0, 0], sizes = [8, 1], strides = [1, 1]} : vector<8x8xf32> to vector<8x1xf32>
    %4 = vector.extract_strided_slice %1 {offsets = [0, 0], sizes = [1, 128], strides = [1, 1]} : vector<8x128xf32> to vector<1x128xf32>
    %5 = vector.broadcast %3 : vector<8x1xf32> to vector<8x128xf32>
    %6 = vector.broadcast %4 : vector<1x128xf32> to vector<8x128xf32>
    %7 = arith.mulf %5, %6 : vector<8x128xf32>
    %8 = vector.broadcast %2 : vector<1x128xf32> to vector<8x128xf32>
    %9 = arith.addf %8, %7 : vector<8x128xf32>
    %10 = vector.extract_strided_slice %0 {offsets = [0, 1], sizes = [8, 1], strides = [1, 1]} : vector<8x8xf32> to vector<8x1xf32>
    %11 = vector.extract_strided_slice %1 {offsets = [1, 0], sizes = [1, 128], strides = [1, 1]} : vector<8x128xf32> to vector<1x128xf32>
    %12 = vector.broadcast %10 : vector<8x1xf32> to vector<8x128xf32>
    %13 = vector.broadcast %11 : vector<1x128xf32> to vector<8x128xf32>
    %14 = arith.mulf %12, %13 : vector<8x128xf32>
    %15 = arith.addf %9, %14 : vector<8x128xf32>
    %16 = vector.extract_strided_slice %0 {offsets = [0, 2], sizes = [8, 1], strides = [1, 1]} : vector<8x8xf32> to vector<8x1xf32>
    %17 = vector.extract_strided_slice %1 {offsets = [2, 0], sizes = [1, 128], strides = [1, 1]} : vector<8x128xf32> to vector<1x128xf32>
    %18 = vector.broadcast %16 : vector<8x1xf32> to vector<8x128xf32>
    %19 = vector.broadcast %17 : vector<1x128xf32> to vector<8x128xf32>
    %20 = arith.mulf %18, %19 : vector<8x128xf32>
    %21 = arith.addf %15, %20 : vector<8x128xf32>
    %22 = vector.extract_strided_slice %0 {offsets = [0, 3], sizes = [8, 1], strides = [1, 1]} : vector<8x8xf32> to vector<8x1xf32>
    %23 = vector.extract_strided_slice %1 {offsets = [3, 0], sizes = [1, 128], strides = [1, 1]} : vector<8x128xf32> to vector<1x128xf32>
    %24 = vector.broadcast %22 : vector<8x1xf32> to vector<8x128xf32>
    %25 = vector.broadcast %23 : vector<1x128xf32> to vector<8x128xf32>
    %26 = arith.mulf %24, %25 : vector<8x128xf32>
    %27 = arith.addf %21, %26 : vector<8x128xf32>
    %28 = vector.extract_strided_slice %0 {offsets = [0, 4], sizes = [8, 1], strides = [1, 1]} : vector<8x8xf32> to vector<8x1xf32>
    %29 = vector.extract_strided_slice %1 {offsets = [4, 0], sizes = [1, 128], strides = [1, 1]} : vector<8x128xf32> to vector<1x128xf32>
    %30 = vector.broadcast %28 : vector<8x1xf32> to vector<8x128xf32>
    %31 = vector.broadcast %29 : vector<1x128xf32> to vector<8x128xf32>
    %32 = arith.mulf %30, %31 : vector<8x128xf32>
    %33 = arith.addf %27, %32 : vector<8x128xf32>
    %34 = vector.extract_strided_slice %0 {offsets = [0, 5], sizes = [8, 1], strides = [1, 1]} : vector<8x8xf32> to vector<8x1xf32>
    %35 = vector.extract_strided_slice %1 {offsets = [5, 0], sizes = [1, 128], strides = [1, 1]} : vector<8x128xf32> to vector<1x128xf32>
    %36 = vector.broadcast %34 : vector<8x1xf32> to vector<8x128xf32>
    %37 = vector.broadcast %35 : vector<1x128xf32> to vector<8x128xf32>
    %38 = arith.mulf %36, %37 : vector<8x128xf32>
    %39 = arith.addf %33, %38 : vector<8x128xf32>
    %40 = vector.extract_strided_slice %0 {offsets = [0, 6], sizes = [8, 1], strides = [1, 1]} : vector<8x8xf32> to vector<8x1xf32>
    %41 = vector.extract_strided_slice %1 {offsets = [6, 0], sizes = [1, 128], strides = [1, 1]} : vector<8x128xf32> to vector<1x128xf32>
    %42 = vector.broadcast %40 : vector<8x1xf32> to vector<8x128xf32>
    %43 = vector.broadcast %41 : vector<1x128xf32> to vector<8x128xf32>
    %44 = arith.mulf %42, %43 : vector<8x128xf32>
    %45 = arith.addf %39, %44 : vector<8x128xf32>
    %46 = vector.extract_strided_slice %0 {offsets = [0, 7], sizes = [8, 1], strides = [1, 1]} : vector<8x8xf32> to vector<8x1xf32>
    %47 = vector.extract_strided_slice %1 {offsets = [7, 0], sizes = [1, 128], strides = [1, 1]} : vector<8x128xf32> to vector<1x128xf32>
    %48 = vector.broadcast %46 : vector<8x1xf32> to vector<8x128xf32>
    %49 = vector.broadcast %47 : vector<1x128xf32> to vector<8x128xf32>
    %50 = arith.mulf %48, %49 : vector<8x128xf32>
    %51 = arith.addf %45, %50 : vector<8x128xf32>
    %cst = arith.constant 0.000000e+00 : f32
    %52 = vector.broadcast %cst : f32 to vector<8x128xf32>
    %53 = arith.maximumf %51, %52 : vector<8x128xf32>
    %c0_5 = arith.constant 0 : index
    %c0_6 = arith.constant 0 : index
    %54 = vector.load %arg4[%c0_5, %c0_6] : memref<128x128xf32, #tpu.memory_space<vmem>>, vector<128x128xf32>
    %cst_7 = arith.constant dense<0.000000e+00> : vector<8x128xf32>
    %55 = tpu.matmul %53, %54, %cst_7 {dimension_numbers = #tpu.dot_dimension_numbers<[1], [0], [0], [1], [0, 0, 1, 1], [], []>} : vector<8x128xf32>, vector<128x128xf32>, vector<8x128xf32> -> vector<8x128xf32>
    %c0_8 = arith.constant 0 : index
    %c0_9 = arith.constant 0 : index
    %56 = vector.load %arg5[%c0_8, %c0_9] : memref<1x128xf32, #tpu.memory_space<vmem>>, vector<1x128xf32>
    %57 = vector.broadcast %56 : vector<1x128xf32> to vector<8x128xf32>
    %58 = arith.addf %55, %57 : vector<8x128xf32>
    %cst_10 = arith.constant 0.000000e+00 : f32
    %59 = vector.broadcast %cst_10 : f32 to vector<8x128xf32>
    %60 = arith.maximumf %58, %59 : vector<8x128xf32>
    %c0_11 = arith.constant 0 : index
    %c0_12 = arith.constant 0 : index
    %61 = vector.load %arg6[%c0_11, %c0_12] : memref<128x128xf32, #tpu.memory_space<vmem>>, vector<128x128xf32>
    %cst_13 = arith.constant dense<0.000000e+00> : vector<8x128xf32>
    %62 = tpu.matmul %60, %61, %cst_13 {dimension_numbers = #tpu.dot_dimension_numbers<[1], [0], [0], [1], [0, 0, 1, 1], [], []>} : vector<8x128xf32>, vector<128x128xf32>, vector<8x128xf32> -> vector<8x128xf32>
    %c0_14 = arith.constant 0 : index
    %c0_15 = arith.constant 0 : index
    %63 = vector.load %arg7[%c0_14, %c0_15] : memref<1x128xf32, #tpu.memory_space<vmem>>, vector<1x128xf32>
    %64 = vector.broadcast %63 : vector<1x128xf32> to vector<8x128xf32>
    %65 = arith.addf %62, %64 : vector<8x128xf32>
    %c0_16 = arith.constant 0 : index
    %c0_17 = arith.constant 0 : index
    %66 = vector.load %arg8[%c0_16, %c0_17] : memref<8x128xf32, #tpu.memory_space<vmem>>, vector<8x128xf32>
    tpu.vector_store %arg8[%c0_16, %c0_17], %65 {strides = array<i32>} : memref<8x128xf32, #tpu.memory_space<vmem>>, vector<8x128xf32>,
    return
  }
  func.func @transform_0(%arg0: i32) -> (i32, i32) {
    %c0_i32 = arith.constant 0 : i32
    %c0_i32_0 = arith.constant 0 : i32
    return %arg0, %c0_i32 : i32, i32
  }
  func.func @transform_1(%arg0: i32) -> (i32, i32) {
    %c0_i32 = arith.constant 0 : i32
    %c0_i32_0 = arith.constant 0 : i32
    %c0_i32_1 = arith.constant 0 : i32
    return %c0_i32, %c0_i32_0 : i32, i32
  }
  func.func @transform_2(%arg0: i32) -> (i32, i32) {
    %c0_i32 = arith.constant 0 : i32
    %c0_i32_0 = arith.constant 0 : i32
    %c0_i32_1 = arith.constant 0 : i32
    return %c0_i32, %c0_i32_0 : i32, i32
  }
  func.func @transform_3(%arg0: i32) -> (i32, i32) {
    %c0_i32 = arith.constant 0 : i32
    %c0_i32_0 = arith.constant 0 : i32
    %c0_i32_1 = arith.constant 0 : i32
    return %c0_i32, %c0_i32_0 : i32, i32
  }
  func.func @transform_4(%arg0: i32) -> (i32, i32) {
    %c0_i32 = arith.constant 0 : i32
    %c0_i32_0 = arith.constant 0 : i32
    %c0_i32_1 = arith.constant 0 : i32
    return %c0_i32, %c0_i32_0 : i32, i32
  }
  func.func @transform_5(%arg0: i32) -> (i32, i32) {
    %c0_i32 = arith.constant 0 : i32
    %c0_i32_0 = arith.constant 0 : i32
    %c0_i32_1 = arith.constant 0 : i32
    return %c0_i32, %c0_i32_0 : i32, i32
  }
  func.func @transform_6(%arg0: i32) -> (i32, i32) {
    %c0_i32 = arith.constant 0 : i32
    %c0_i32_0 = arith.constant 0 : i32
    %c0_i32_1 = arith.constant 0 : i32
    return %c0_i32, %c0_i32_0 : i32, i32
  }
  func.func @transform_7(%arg0: i32) -> (i32, i32) {
    %c0_i32 = arith.constant 0 : i32
    %c0_i32_0 = arith.constant 0 : i32
    return %arg0, %c0_i32 : i32, i32
  }
}

</mosaic_0001>

<bundles_post_ra>
// kernel: control_point_encoder.1
= control target key start
LH: loop header
LB: loop body
LE: loop exit
PB: predicated region body
PF: predicated region fallthrough
CT: control target
= control target key end

     0   :  { %v484_v0 = vmov 2   ;;  %v485_v1 = vmov 0   ;;  %v486_v7 = vmov 0.0|0.0   ;;  %v487_v10 = vmov 3   ;;  %s665_s0 = inlined_call_operand.vmem [shape: f32[8,8], index: 0, kind: input, shape index: {}]   ;;  %s666_s3 = inlined_call_operand.vmem [shape: f32[128,128], index: 3, kind: input, shape index: {}]   ;;  %s667_s5 = inlined_call_operand.vmem [shape: f32[128,128], index: 5, kind: input, shape index: {}]   ;;  %s668_s1 = inlined_call_operand.vmem [shape: f32[8,128], index: 1, kind: input, shape index: {}]   ;;  %s669_s2 = inlined_call_operand.vmem [shape: f32[1,128], index: 2, kind: input, shape index: {}]   ;;  %s670_s4 = inlined_call_operand.vmem [shape: f32[1,128], index: 4, kind: input, shape index: {}]   ;;  %s671_s6 = inlined_call_operand.vmem [shape: f32[1,128], index: 6, kind: input, shape index: {}]   ;;  %s672_s7 = inlined_call_operand.vmem [shape: f32[8,128], index: 7, kind: output, shape index: {}]  }
   0x1   :  { %477 = vset.pattern.permute.xlu1 %v484_v0  ;;  %475 = vset.pattern.permute.xlu0 %v485_v1  ;;  %v26_v2 = vld [vmem:[%s665_s0] sm:$0xff]  ;;  %v118_v4 = vld [vmem:[%s666_s3 + $0x8] sm:$0xff]  ;;  %v119_v5 = vld [vmem:[%s666_s3 + $0x10] sm:$0xff]  ;;  %v488_v11 = vmov 1   ;;  %v489_v17 = vmov 4   ;;  %v490_v18 = vmov 5   ;;  %v34_v56 = vlaneseq }
   0x2   :  { %v117_v3 = vld [vmem:[%s666_s3] sm:$0xff]  ;;  %57 = vperm.xlu1 %477, %v26_v2   ;;  %31 = vperm.xlu0 %475, %v26_v2   ;;  %v120_v6 = vld [vmem:[%s666_s3 + $0x18] sm:$0xff]  ;;  %v122_v13 = vld [vmem:[%s666_s3 + $0x28] sm:$0xff]  ;;  %v491_v22 = vmov 6   ;;  %v492_v23 = vmov 7   ;;  %vm493_vm0 = vmmov 0  }
   0x3   :  { %416 = vmatprep.subr.bf16.mxu0 %v486_v7  ;;  %v417_v8 = vpack.c.bf16 %v118_v4, %v117_v3  ;;  %440 = vmatprep.subr.bf16.mxu1 %v486_v7  ;;  %v420_v9 = vpack.c.bf16 %v120_v6, %v119_v5  ;;  %v121_v12 = vld [vmem:[%s666_s3 + $0x20] sm:$0xff]  ;;  %v123_v15 = vld [vmem:[%s666_s3 + $0x30] sm:$0xff]  ;;  %v124_v16 = vld [vmem:[%s666_s3 + $0x38] sm:$0xff]  ;;  %v494_v33 = vmov 0.0   ;;  %v35_v57 = vshrl.u32 %v34_v56, 7 }
   0x4   :  { %v423_v14 = vpack.c.bf16 %v122_v13, %v121_v12  ;;  %v426_v19 = vpack.c.bf16 %v124_v16, %v123_v15  ;;  %v125_v20 = vld [vmem:[%s666_s3 + $0x40] sm:$0xff]  ;;  %v126_v21 = vld [vmem:[%s666_s3 + $0x48] sm:$0xff]  ;;  %v127_v25 = vld [vmem:[%s666_s3 + $0x50] sm:$0xff]  ;;  %378 = vmatprep.mubr.msk.f32.mxu0 %vm493_vm0, %v494_v33  ;;  %413 = vmatprep.mubr.msk.f32.mxu1 %vm493_vm0, %v494_v33 }
   0x5   :  { %418 = vmatpush3.bf16.msra.mxu0 %v417_v8  ;;  %v429_v24 = vpack.c.bf16 %v126_v21, %v125_v20  ;;  %v128_v26 = vld [vmem:[%s666_s3 + $0x58] sm:$0xff]  ;;  %v129_v28 = vld [vmem:[%s666_s3 + $0x60] sm:$0xff]  ;;  %v130_v29 = vld [vmem:[%s666_s3 + $0x68] sm:$0xff]  ;;  %v36_v58 = vsub.s32 0, %v35_v57  ;;  %v52_v61 = vsub.s32 1, %v35_v57  ;;  %v62_v62 = vsub.s32 2, %v35_v57 }
   0x6   :  { %478 = vset.pattern.permute.xlu1 %v487_v10  ;;  %476 = vset.pattern.permute.xlu0 %v488_v11  ;;  %v432_v27 = vpack.c.bf16 %v128_v26, %v127_v25  ;;  %v435_v30 = vpack.c.bf16 %v130_v29, %v129_v28  ;;  %v131_v31 = vld [vmem:[%s666_s3 + $0x70] sm:$0xff]  ;;  %v132_v32 = vld [vmem:[%s666_s3 + $0x78] sm:$0xff]  ;;  %v211_v35 = vld [vmem:[%s667_s5] sm:$0xff]  ;;  %v72_v3 = vsub.s32 3, %v35_v57  ;;  %v82_v5 = vsub.s32 4, %v35_v57 }
   0x7   :  { %67 = vperm.xlu1 %478, %v26_v2   ;;  %47 = vperm.xlu0 %476, %v26_v2   ;;  %v438_v34 = vpack.c.bf16 %v132_v32, %v131_v31  ;;  %v212_v36 = vld [vmem:[%s667_s5 + $0x8] sm:$0xff]  ;;  %v213_v37 = vld [vmem:[%s667_s5 + $0x10] sm:$0xff]  ;;  %v214_v39 = vld [vmem:[%s667_s5 + $0x18] sm:$0xff]  ;;  %v92_v10 = vsub.s32 5, %v35_v57  ;;  %v112_v26 = vsub.s32 7, %v35_v57 }
   0x8   :  { %419 = vmatprep.subr.bf16.mxu0 %v486_v7  ;;  %v441_v38 = vpack.c.bf16 %v212_v36, %v211_v35  ;;  %v444_v40 = vpack.c.bf16 %v214_v39, %v213_v37  ;;  %v215_v41 = vld [vmem:[%s667_s5 + $0x20] sm:$0xff]  ;;  %v216_v42 = vld [vmem:[%s667_s5 + $0x28] sm:$0xff]  ;;  %v217_v44 = vld [vmem:[%s667_s5 + $0x30] sm:$0xff] }
   0x9   :  { %421 = vmatpush3.bf16.msra.mxu0 %v420_v9  ;;  %v447_v43 = vpack.c.bf16 %v216_v42, %v215_v41  ;;  %v218_v45 = vld [vmem:[%s667_s5 + $0x38] sm:$0xff]  ;;  %v219_v47 = vld [vmem:[%s667_s5 + $0x40] sm:$0xff]  ;;  %v220_v48 = vld [vmem:[%s667_s5 + $0x48] sm:$0xff] }
   0xa   :  { %422 = vmatprep.subr.bf16.mxu0 %v486_v7  ;;  %442 = vmatpush3.bf16.msra.mxu1 %v441_v38  ;;  %v450_v46 = vpack.c.bf16 %v218_v45, %v217_v44  ;;  %v453_v49 = vpack.c.bf16 %v220_v48, %v219_v47  ;;  %v221_v50 = vld [vmem:[%s667_s5 + $0x50] sm:$0xff]  ;;  %v222_v51 = vld [vmem:[%s667_s5 + $0x58] sm:$0xff]  ;;  %v223_v53 = vld [vmem:[%s667_s5 + $0x60] sm:$0xff] }
   0xb   :  { %479 = vset.pattern.permute.xlu1 %v489_v17  ;;  %480 = vset.pattern.permute.xlu0 %v490_v18  ;;  %v456_v52 = vpack.c.bf16 %v222_v51, %v221_v50  ;;  %v224_v54 = vld [vmem:[%s667_s5 + $0x68] sm:$0xff]  ;;  %v27_v59 = vld [vmem:[%s668_s1] sm:$0xff]  ;;  %v102_v17 = vsub.s32 6, %v35_v57  ;;  %v225_v37 = vld [vmem:[%s667_s5 + $0x70] sm:$0xff] }
   0xc   :  { %77 = vperm.xlu1 %479, %v26_v2   ;;  %87 = vperm.xlu0 %480, %v26_v2   ;;  %v459_v55 = vpack.c.bf16 %v224_v54, %v223_v53  ;;  %v37_v60 = vrot.slane %v27_v59, %v36_v58  ;;  %v309_v1 = vld [vmem:[%s669_s2] ss:$0 sm:$0xff]  ;;  %v53_v4 = vrot.slane %v27_v59, %v52_v61  ;;  %v226_v38 = vld [vmem:[%s667_s5 + $0x78] sm:$0xff] }
   0xd   :  { %424 = vmatpush3.bf16.msra.mxu0 %v423_v14  ;;  %443 = vmatprep.subr.bf16.mxu1 %v486_v7  ;;  %v63_v6 = vrot.slane %v27_v59, %v62_v62  ;;  %v73_v11 = vrot.slane %v27_v59, %v72_v3  ;;  %v83_v13 = vrot.slane %v27_v59, %v82_v5  ;;  %v311_v45 = vld [vmem:[%s671_s6] ss:$0 sm:$0xff] }
   0xe   :  { %425 = vmatprep.subr.bf16.mxu0 %v486_v7  ;;  %445 = vmatpush3.bf16.msra.mxu1 %v444_v40  ;;  %v93_v16 = vrot.slane %v27_v59, %v92_v10  ;;  %v103_v25 = vrot.slane %v27_v59, %v102_v17  ;;  %v113_v31 = vrot.slane %v27_v59, %v112_v26  ;;  %v310_v40 = vld [vmem:[%s670_s4] ss:$0 sm:$0xff] }
   0xf   :  { %446 = vmatprep.subr.bf16.mxu1 %v486_v7  ;;  %v462_v39 = vpack.c.bf16 %v226_v38, %v225_v37 }
  0x10   :  { %481 = vset.pattern.permute.xlu1 %v491_v22  ;;  %483 = vset.pattern.permute.xlu0 %v492_v23 }
  0x11   :  { %97 = vperm.xlu1 %481, %v26_v2   ;;  %427 = vmatpush3.bf16.msra.mxu0 %v426_v19 }
  0x12   :  { %428 = vmatprep.subr.bf16.mxu0 %v486_v7  ;;  %448 = vmatpush3.bf16.msra.mxu1 %v447_v43 }
  0x13   :  { %449 = vmatprep.subr.bf16.mxu1 %v486_v7 }
  0x15   :  { %482 = vset.pattern.permute.xlu1 %v492_v23  ;;  %430 = vmatpush3.bf16.msra.mxu0 %v429_v24 }
  0x16   :  { %107 = vperm.xlu1 %482, %v26_v2   ;;  %431 = vmatprep.subr.bf16.mxu0 %v486_v7 }
  0x17   :  { %451 = vmatpush3.bf16.msra.mxu1 %v450_v46 }
  0x18   :  { %452 = vmatprep.subr.bf16.mxu1 %v486_v7 }
  0x19   :  { %433 = vmatpush3.bf16.msra.mxu0 %v432_v27 }
  0x1a   :  { %434 = vmatprep.subr.bf16.mxu0 %v486_v7 }
  0x1b   :  { %454 = vmatpush3.bf16.msra.mxu1 %v453_v49 }
  0x1c   :  { %455 = vmatprep.subr.bf16.mxu1 %v486_v7 }
  0x1d   :  { %436 = vmatpush3.bf16.msra.mxu0 %v435_v30 }
  0x1e   :  { %437 = vmatprep.subr.bf16.mxu0 %v486_v7 }
  0x1f   :  { %457 = vmatpush3.bf16.msra.mxu1 %v456_v52 }
  0x20   :  { %458 = vmatprep.subr.bf16.mxu1 %v486_v7 }
  0x21   :  { %439 = vmatpush3.bf16.msra.mxu0 %v438_v34 }
  0x23   :  { %460 = vmatpush3.bf16.msra.mxu1 %v459_v55 }
  0x24   :  { %461 = vmatprep.subr.bf16.mxu1 %v486_v7 }
  0x27   :  { %463 = vmatpush3.bf16.msra.mxu1 %v462_v39 }
  0x81   :  { %v58_v63 = vpop.permute.xlu1 %57  ;;  %v32_v0 = vpop.permute.xlu0 %31 }
  0x82   :  { %v38_v2 = vmul.f32 %v37_v60, %v32_v0  ;;  %v64_v14 = vmul.f32 %v63_v6, %v58_v63 }
  0x84   :  { %v45_v7 = vadd.f32 %v309_v1, %v38_v2 }
  0x86   :  { %v68_v8 = vpop.permute.xlu1 %67  ;;  %v48_v9 = vpop.permute.xlu0 %47 }
  0x87   :  { %v54_v12 = vmul.f32 %v53_v4, %v48_v9  ;;  %v74_v18 = vmul.f32 %v73_v11, %v68_v8 }
  0x89   :  { %v55_v15 = vadd.f32 %v54_v12, %v45_v7 }
  0x8b   :  { %v65_v19 = vadd.f32 %v64_v14, %v55_v15  ;;  %v78_v20 = vpop.permute.xlu1 %77  ;;  %v88_v21 = vpop.permute.xlu0 %87 }
  0x8c   :  { %v84_v22 = vmul.f32 %v83_v13, %v78_v20  ;;  %v94_v24 = vmul.f32 %v93_v16, %v88_v21 }
  0x8d   :  { %v75_v23 = vadd.f32 %v74_v18, %v65_v19 }
  0x8f   :  { %v85_v27 = vadd.f32 %v84_v22, %v75_v23 }
  0x90   :  { %v98_v28 = vpop.permute.xlu1 %97 }
  0x91   :  { %v95_v29 = vadd.f32 %v94_v24, %v85_v27  ;;  %v104_v30 = vmul.f32 %v103_v25, %v98_v28 }
  0x93   :  { %v105_v33 = vadd.f32 %v104_v30, %v95_v29 }
  0x95   :  { %v108_v32 = vpop.permute.xlu1 %107 }
  0x96   :  { %v114_v34 = vmul.f32 %v113_v31, %v108_v32 }
  0x98   :  { %v115_v35 = vadd.f32 %v114_v34, %v105_v33 }
  0x9a   :  { %v116_v36 = vmax.f32 %v115_v35, 0.0 }
  0x9c   :  { %379 = vmatmul.mubr.f32.vlgmr.msra.gmra.mrb[0].mxu0 %v116_v36 }
 0x16f   :  { %v206_v41 = vpop.f32.mrb[0].mxu0 }
 0x170   :  { %v207_v42 = vadd.f32 %v310_v40, %v206_v41  ;;  %v380_v43 = vpop.f32.mrb[1].mxu0 }
 0x172   :  { %v210_v44 = vmax.f32 %v207_v42, 0.0 }
 0x174   :  { %414 = vmatmul.mubr.f32.vlgmr.msra.gmra.mrb[0].mxu1 %v210_v44 }
 0x247   :  { %v300_v46 = vpop.f32.mrb[0].mxu1 }
 0x248   :  { %v301_v47 = vadd.f32 %v311_v45, %v300_v46  ;;  %v415_v48 = vpop.f32.mrb[1].mxu1 }
 0x24a   :  { %304 = vst [vmem:[%s672_s7] sm:$0xff] %v301_v47 }

</bundles_post_ra>
